<compile_context>
chip_gen: v6e
topology: v6e:2x2x1
jax: 0.10.0
libtpu: 0.0.40
codegen_flags: <defaults>
</compile_context>

<pallas_src>
import jax
import jax.numpy as jnp
from jax.experimental import pallas as pl
from jax.experimental.pallas import tpu as pltpu


def _make_kernel(o_p, o_n, delta_p, delta_n, gamma, tm,
                 feats_resident, compute_col_inv):
    def kernel(feats_ref, w_ref, labels_ref, out_ref, *scratch):
        c_idx = pl.program_id(0)          # C-tile index (outer, "parallel")
        b_idx = pl.program_id(1)          # B-tile index (inner, "arbitrary")
        tn = out_ref.shape[1]

        if feats_resident:
            row0 = pl.multiple_of(b_idx * tm, tm)
            f_tile = feats_ref[pl.ds(row0, tm), :]       # (tm, D)
            lab_tile = labels_ref[pl.ds(row0, tm), :]    # (tm, 1) int32
        else:
            f_tile = feats_ref[...]
            lab_tile = labels_ref[...]

        if compute_col_inv:
            winv_ref = scratch[0]

            # Column inverse norms of the raw f32 weight tile, computed once per
            # C-tile (b == 0) and reused for every B-tile.  Replaces a second
            # full HBM pass over the (D, C) weight in the wrapper.
            @pl.when(b_idx == 0)
            def _():
                w32 = w_ref[...].astype(jnp.float32)
                ss = jnp.sum(w32 * w32, axis=0, keepdims=True)      # (1, tn)
                winv_ref[...] = jax.lax.rsqrt(jnp.maximum(ss, 1e-24))

        # Raw inner products on the MXU with f32 accumulation.
        cos = jnp.dot(f_tile, w_ref[...], preferred_element_type=jnp.float32)
        if compute_col_inv:
            cos = cos * scratch[0][...]          # fold column normalization in
        cos = jnp.clip(cos, -1.0, 1.0)

        # One-hot positive mask: (1, tn) iota row vs label offset by the C-tile
        # origin.
        col_ids = jax.lax.broadcasted_iota(jnp.int32, (1, tn), 1)
        one_hot = col_ids == (lab_tile - c_idx * tn)     # (tm, tn) bool

        # Circle-loss logits (alpha uses detached cos -> same forward value).
        alpha_p = jnp.maximum(o_p - cos, 0.0)
        alpha_n = jnp.maximum(cos - o_n, 0.0)
        logit_p = alpha_p * (cos - delta_p)
        logit_n = alpha_n * (cos - delta_n)

        out_ref[...] = jnp.where(one_hot, logit_p, logit_n) * gamma

    return kernel


def circle_loss_forward(feats, weight, labels, *, margin=0.25, gamma=256.0,
                        tm=None, tn=None, mxu_dtype=jnp.float32):
    """feats: (B, D) f32, weight: (D, C) f32, labels: (B,) int -> (B, C) f32.

    mxu_dtype=jnp.float32  : bit-faithful to the PyTorch forward; raw weight is
                             streamed once and column-normalized in-kernel.
    mxu_dtype=jnp.bfloat16 : fast path (recommended default on v5e); the wrapper
                             pre-normalizes + casts the weight, halving the
                             dominant HBM stream.
    """
    B, D = feats.shape
    D2, C = weight.shape
    assert D == D2, "feat_dim mismatch"
    compute_col_inv = (jnp.dtype(mxu_dtype) == jnp.dtype(jnp.float32))

    # --- operand prep: tiny fused passes; no extra full-weight HBM read on the
    # --- f32 path ----------------------------------------------------------
    f32 = jnp.float32
    f_norm = jnp.maximum(
        jnp.sqrt(jnp.sum(jnp.square(feats.astype(f32)), axis=1, keepdims=True)),
        1e-12)
    feats_in = (feats.astype(f32) / f_norm).astype(mxu_dtype)       # (B, D)

    if compute_col_inv:
        weight_in = weight.astype(f32)        # raw; normalized in-kernel
    else:
        w_norm = jnp.maximum(
            jnp.sqrt(jnp.sum(jnp.square(weight.astype(f32)), axis=0,
                             keepdims=True)), 1e-12)
        weight_in = (weight.astype(f32) / w_norm).astype(mxu_dtype)

    labels2d = labels.astype(jnp.int32).reshape(B, 1)

    f_bytes = jnp.dtype(feats_in.dtype).itemsize
    w_bytes = jnp.dtype(weight_in.dtype).itemsize

    # --- VMEM budget (v5e/v6e: 128 MiB, v7x: 64 MiB physical) ---------------
    try:
        vmem_cap = int(pltpu.get_tpu_info().vmem_capacity_bytes)
    except Exception:
        vmem_cap = 64 * 1024 * 1024
    vmem_limit = int(vmem_cap * 0.8)
    tile_budget = int(vmem_cap * 0.6)

    # --- tile sizes ----------------------------------------------------------
    if tm is None:
        tm = B if B <= 256 else 256
    tm = max(8, ((min(int(tm), max(B, 8)) + 7) // 8) * 8)
    B_pad = ((B + tm - 1) // tm) * tm
    nb = B_pad // tm

    feats_resident = (B_pad * (D * f_bytes + 4)) <= tile_budget // 3
    resident_bytes = (B_pad * (D * f_bytes + 4) if feats_resident
                      else 2 * tm * (D * f_bytes + 4))

    def _fits(t):
        need = (resident_bytes
                + 2 * D * t * w_bytes       # double-buffered weight tile
                + 2 * tm * t * 4            # double-buffered output tile
                + t * 4                     # column inv-norm scratch
                + (1 << 20))                # slack for compiler scratch
        return need <= tile_budget

    if tn is None:
        if C <= 128:
            tn = C
        else:
            cap = min(1024, ((C + 127) // 128) * 128)
            cands = [t for t in (1024, 512, 256, 128) if t <= cap] or [128]
            tn = cands[-1]
            for t in cands:                 # largest tile that fits VMEM
                if _fits(t):
                    tn = t
                    break
    tn = int(tn)
    nc = -(-C // tn)

    # --- pad batch so the resident-feats slicing is always in bounds --------
    if B_pad != B:
        feats_in = jnp.pad(feats_in, ((0, B_pad - B), (0, 0)))
        labels2d = jnp.pad(labels2d, ((0, B_pad - B), (0, 0)))

    if feats_resident:
        feats_spec = pl.BlockSpec((B_pad, D), lambda c, b: (0, 0))
        labels_spec = pl.BlockSpec((B_pad, 1), lambda c, b: (0, 0))
    else:
        feats_spec = pl.BlockSpec((tm, D), lambda c, b: (b, 0))
        labels_spec = pl.BlockSpec((tm, 1), lambda c, b: (b, 0))
    weight_spec = pl.BlockSpec((D, tn), lambda c, b: (0, c))   # inner-invariant

    scratch_shapes = ([pltpu.VMEM((1, tn), jnp.float32)]
                      if compute_col_inv else [])

    kernel = _make_kernel(1.0 + margin, -margin, 1.0 - margin, margin,
                          float(gamma), tm, feats_resident, compute_col_inv)

    out = pl.pallas_call(
        kernel,
        out_shape=jax.ShapeDtypeStruct((B_pad, C), jnp.float32),
        grid_spec=pltpu.PrefetchScalarGridSpec(
            num_scalar_prefetch=0,
            grid=(nc, nb),                       # C outer, B inner
            in_specs=[feats_spec, weight_spec, labels_spec],
            out_specs=pl.BlockSpec((tm, tn), lambda c, b: (b, c)),
            scratch_shapes=scratch_shapes),
        compiler_params=pltpu.CompilerParams(
            # C axis "parallel" (v7x megacore shards disjoint weight columns);
            # B axis must stay "arbitrary" because of the b==0-gated scratch.
            dimension_semantics=("parallel", "arbitrary"),
            vmem_limit_bytes=vmem_limit),
    )(feats_in, weight_in, labels2d)

    return out[:B] if B_pad != B else out


def init_circle_weight(key, feat_dim, num_class):
    """Mimics: torch.Tensor(D, C).uniform_(-1, 1).renorm_(2, 1, 1e-5).mul_(1e5)."""
    w = jax.random.uniform(key, (feat_dim, num_class), jnp.float32, -1.0, 1.0)
    col_norm = jnp.sqrt(jnp.sum(w * w, axis=0, keepdims=True))
    maxnorm = 1e-5
    scale = jnp.where(col_norm > maxnorm, maxnorm / (col_norm + 1e-7), 1.0)
    return w * scale * 1e5


def circle_loss_reference(feats, weight, labels, *, margin=0.25, gamma=256.0):
    """Pure-JAX reference mirroring the PyTorch forward."""
    w_n = weight / jnp.maximum(
        jnp.sqrt(jnp.sum(weight * weight, axis=0, keepdims=True)), 1e-12)
    f_n = feats / jnp.maximum(
        jnp.sqrt(jnp.sum(feats * feats, axis=1, keepdims=True)), 1e-12)
    cos = jnp.clip(f_n @ w_n, -1.0, 1.0)
    one_hot = jax.nn.one_hot(labels, weight.shape[1], dtype=jnp.bool_)
    o_p, o_n = 1.0 + margin, -margin
    delta_p, delta_n = 1.0 - margin, margin
    logit_p = jnp.maximum(o_p - cos, 0.0) * (cos - delta_p)
    logit_n = jnp.maximum(cos - o_n, 0.0) * (cos - delta_n)
    return jnp.where(one_hot, logit_p, logit_n) * gamma


if __name__ == "__main__":
    B, D, C = 16, 32, 256
    key = jax.random.PRNGKey(0)
    k_w, k_f, k_l = jax.random.split(key, 3)

    weight = init_circle_weight(k_w, D, C)
    feats = jax.random.normal(k_f, (B, D), jnp.float32)
    labels = jax.random.randint(k_l, (B,), 0, C, jnp.int32)

    ref = circle_loss_reference(feats, weight, labels)

    # 1) auto-tiled f32 path (single tile at these shapes).
    out = jax.block_until_ready(circle_loss_forward(feats, weight, labels))
    assert out.shape == (B, C) and out.dtype == jnp.float32
    assert jnp.allclose(out, ref, rtol=1e-5, atol=1e-4), "f32 auto-tile mismatch"

    # 2) forced small tiles: 2 B-tiles x 2 C-tiles exercises the resident-feats
    #    slicing, the C-tile iota offset and the b==0-gated inv-norm scratch.
    out_t = jax.block_until_ready(
        circle_loss_forward(feats, weight, labels, tm=8, tn=128))
    assert jnp.allclose(out_t, ref, rtol=1e-5, atol=1e-4), "f32 tiled mismatch"

    # 3) non-divisible shapes (batch padding + masked last C tile).
    B2, C2 = 20, 200
    feats2 = jax.random.normal(jax.random.PRNGKey(1), (B2, D), jnp.float32)
    labels2 = jax.random.randint(jax.random.PRNGKey(2), (B2,), 0, C2, jnp.int32)
    weight2 = init_circle_weight(jax.random.PRNGKey(3), D, C2)
    ref2 = circle_loss_reference(feats2, weight2, labels2)
    out2 = jax.block_until_ready(
        circle_loss_forward(feats2, weight2, labels2, tm=8, tn=128))
    assert out2.shape == (B2, C2)
    assert jnp.allclose(out2, ref2, rtol=1e-5, atol=1e-4), "ragged mismatch"

    # 4) bf16 MXU path (weight pre-normalized + cast in the wrapper).
    out_bf16 = jax.block_until_ready(
        circle_loss_forward(feats, weight, labels, mxu_dtype=jnp.bfloat16))
    assert jnp.allclose(out_bf16, ref, rtol=0.1, atol=2.0), "bf16 mismatch"

    print("KERNEL_OK")
</pallas_src>

<mosaic_0001>
module attributes {stable_mosaic.version = 11 : i64} {
  func.func @kernel(%arg0: i32, %arg1: i32, %arg2: memref<16x32xf32, #tpu.memory_space<vmem>>, %arg3: memref<32x256xf32, #tpu.memory_space<vmem>>, %arg4: memref<16x1xi32, #tpu.memory_space<vmem>>, %arg5: memref<16x256xf32, #tpu.memory_space<vmem>>, %arg6: memref<1x256xf32, #tpu.memory_space<vmem>>) attributes {dimension_semantics = [#tpu.dimension_semantics<parallel>, #tpu.dimension_semantics<arbitrary>], iteration_bounds = array<i64: 1, 1>, scalar_prefetch = 0 : i64, scratch_operands = 1 : i64, tpu.core_type = #tpu.core_type<tc>, window_params = [{pipeline_mode = #tpu.pipeline_mode<synchronous>, transform_indices = @transform_0, window_bounds = array<i64: 16, 32>}, {transform_indices = @transform_1, window_bounds = array<i64: 32, 256>}, {pipeline_mode = #tpu.pipeline_mode<synchronous>, transform_indices = @transform_2, window_bounds = array<i64: 16, 1>}, {transform_indices = @transform_3, window_bounds = array<i64: 16, 256>}]} {
    %c16_i32 = arith.constant 16 : i32
    %0 = arith.muli %arg1, %c16_i32 : i32
    %1 = tpu.assume_multiple %0, 16 : i32
    %2 = arith.index_cast %1 : i32 to index
    %c0 = arith.constant 0 : index
    %3 = vector.load %arg2[%2, %c0] : memref<16x32xf32, #tpu.memory_space<vmem>>, vector<16x32xf32>
    %4 = arith.index_cast %1 : i32 to index
    %c0_0 = arith.constant 0 : index
    %5 = vector.load %arg4[%4, %c0_0] : memref<16x1xi32, #tpu.memory_space<vmem>>, vector<16x1xi32>
    %c0_i32 = arith.constant 0 : i32
    %6 = arith.cmpi eq, %arg1, %c0_i32 : i32
    %7 = arith.extui %6 : i1 to i32
    %c0_i32_1 = arith.constant 0 : i32
    %8 = arith.cmpi ne, %7, %c0_i32_1 : i32
    scf.if %8 {
      %c0_17 = arith.constant 0 : index
      %c0_18 = arith.constant 0 : index
      %43 = vector.load %arg3[%c0_17, %c0_18] : memref<32x256xf32, #tpu.memory_space<vmem>>, vector<32x256xf32>
      %44 = arith.mulf %43, %43 : vector<32x256xf32>
      %cst_19 = arith.constant dense<0.000000e+00> : vector<256xf32>
      %45 = vector.multi_reduction <add>, %44, %cst_19 [0] : vector<32x256xf32> to vector<256xf32>
      %46 = vector.shape_cast %45 : vector<256xf32> to vector<1x256xf32>
      %cst_20 = arith.constant 1.000000e-24 : f32
      %47 = vector.broadcast %cst_20 : f32 to vector<1x256xf32>
      %48 = arith.maximumf %46, %47 : vector<1x256xf32>
      %49 = math.rsqrt %48 : vector<1x256xf32>
      %c0_21 = arith.constant 0 : index
      %c0_22 = arith.constant 0 : index
      %50 = vector.load %arg6[%c0_21, %c0_22] : memref<1x256xf32, #tpu.memory_space<vmem>>, vector<1x256xf32>
      tpu.vector_store %arg6[%c0_21, %c0_22], %49 {strides = array<i32>} : memref<1x256xf32, #tpu.memory_space<vmem>>, vector<1x256xf32>,
    } else {
    }
    %c0_2 = arith.constant 0 : index
    %c0_3 = arith.constant 0 : index
    %9 = vector.load %arg3[%c0_2, %c0_3] : memref<32x256xf32, #tpu.memory_space<vmem>>, vector<32x256xf32>
    %cst = arith.constant dense<0.000000e+00> : vector<16x256xf32>
    %10 = tpu.matmul %3, %9, %cst {dimension_numbers = #tpu.dot_dimension_numbers<[1], [0], [0], [1], [0, 0, 1, 1], [], []>} : vector<16x32xf32>, vector<32x256xf32>, vector<16x256xf32> -> vector<16x256xf32>
    %c0_4 = arith.constant 0 : index
    %c0_5 = arith.constant 0 : index
    %11 = vector.load %arg6[%c0_4, %c0_5] : memref<1x256xf32, #tpu.memory_space<vmem>>, vector<1x256xf32>
    %12 = vector.broadcast %11 : vector<1x256xf32> to vector<16x256xf32>
    %13 = arith.mulf %10, %12 : vector<16x256xf32>
    %cst_6 = arith.constant -1.000000e+00 : f32
    %cst_7 = arith.constant 1.000000e+00 : f32
    %14 = vector.broadcast %cst_6 : f32 to vector<16x256xf32>
    %15 = arith.maximumf %14, %13 : vector<16x256xf32>
    %16 = vector.broadcast %cst_7 : f32 to vector<16x256xf32>
    %17 = arith.minimumf %16, %15 : vector<16x256xf32>
    %18 = tpu.iota {dimensions = array<i32: 1>} : vector<1x256xi32>
    %c256_i32 = arith.constant 256 : i32
    %19 = arith.muli %arg0, %c256_i32 : i32
    %20 = vector.broadcast %19 : i32 to vector<16x1xi32>
    %21 = arith.subi %5, %20 : vector<16x1xi32>
    %22 = vector.broadcast %18 : vector<1x256xi32> to vector<16x256xi32>
    %23 = vector.broadcast %21 : vector<16x1xi32> to vector<16x256xi32>
    %24 = arith.cmpi eq, %22, %23 : vector<16x256xi32>
    %cst_8 = arith.constant 1.250000e+00 : f32
    %25 = vector.broadcast %cst_8 : f32 to vector<16x256xf32>
    %26 = arith.subf %25, %17 : vector<16x256xf32>
    %cst_9 = arith.constant 0.000000e+00 : f32
    %27 = vector.broadcast %cst_9 : f32 to vector<16x256xf32>
    %28 = arith.maximumf %26, %27 : vector<16x256xf32>
    %cst_10 = arith.constant -2.500000e-01 : f32
    %29 = vector.broadcast %cst_10 : f32 to vector<16x256xf32>
    %30 = arith.subf %17, %29 : vector<16x256xf32>
    %cst_11 = arith.constant 0.000000e+00 : f32
    %31 = vector.broadcast %cst_11 : f32 to vector<16x256xf32>
    %32 = arith.maximumf %30, %31 : vector<16x256xf32>
    %cst_12 = arith.constant 7.500000e-01 : f32
    %33 = vector.broadcast %cst_12 : f32 to vector<16x256xf32>
    %34 = arith.subf %17, %33 : vector<16x256xf32>
    %35 = arith.mulf %28, %34 : vector<16x256xf32>
    %cst_13 = arith.constant 2.500000e-01 : f32
    %36 = vector.broadcast %cst_13 : f32 to vector<16x256xf32>
    %37 = arith.subf %17, %36 : vector<16x256xf32>
    %38 = arith.mulf %32, %37 : vector<16x256xf32>
    %39 = arith.select %24, %35, %38 : vector<16x256xi1>, vector<16x256xf32>
    %cst_14 = arith.constant 2.560000e+02 : f32
    %40 = vector.broadcast %cst_14 : f32 to vector<16x256xf32>
    %41 = arith.mulf %39, %40 : vector<16x256xf32>
    %c0_15 = arith.constant 0 : index
    %c0_16 = arith.constant 0 : index
    %42 = vector.load %arg5[%c0_15, %c0_16] : memref<16x256xf32, #tpu.memory_space<vmem>>, vector<16x256xf32>
    tpu.vector_store %arg5[%c0_15, %c0_16], %41 {strides = array<i32>} : memref<16x256xf32, #tpu.memory_space<vmem>>, vector<16x256xf32>,
    return
  }
  func.func @transform_0(%arg0: i32, %arg1: i32) -> (i32, i32) {
    %c0_i32 = arith.constant 0 : i32
    %c0_i32_0 = arith.constant 0 : i32
    %c0_i32_1 = arith.constant 0 : i32
    return %c0_i32, %c0_i32_0 : i32, i32
  }
  func.func @transform_1(%arg0: i32, %arg1: i32) -> (i32, i32) {
    %c0_i32 = arith.constant 0 : i32
    %c0_i32_0 = arith.constant 0 : i32
    return %c0_i32, %arg0 : i32, i32
  }
  func.func @transform_2(%arg0: i32, %arg1: i32) -> (i32, i32) {
    %c0_i32 = arith.constant 0 : i32
    %c0_i32_0 = arith.constant 0 : i32
    %c0_i32_1 = arith.constant 0 : i32
    return %c0_i32, %c0_i32_0 : i32, i32
  }
  func.func @transform_3(%arg0: i32, %arg1: i32) -> (i32, i32) {
    %c0_i32 = arith.constant 0 : i32
    return %arg1, %arg0 : i32, i32
  }
}

</mosaic_0001>

<bundles_post_ra>
// kernel: tpu_custom_call.1
= control target key start
LH: loop header
LB: loop body
LE: loop exit
PB: predicated region body
PF: predicated region fallthrough
CT: control target
= control target key end

     0   :  { %8 = vsyncpa [#allocation4], 0  ;;  %s430_s0 = inlined_call_operand.vmem [shape: f32[16,32], index: 0, kind: input, shape index: {}]   ;;  %s431_s1 = inlined_call_operand.hbm [shape: f32[32,256], index: 1, kind: input, shape index: {}]   ;;  %s432_s2 = inlined_call_operand.vmem [shape: s32[16,1], index: 2, kind: input, shape index: {}]   ;;  %s433_s3 = inlined_call_operand.hbm [shape: f32[16,256], index: 3, kind: output, shape index: {}]  }
   0x1   :  { %9 = vsyncpa [#allocation5], 0  ;;  %s377_s12 = smov [#allocation3]  }
   0x2   :  { %s17_s13 = sshll.u32 %s377_s12, 4  ;;  %s18_s13 = int_to_ptr.vmem [resolvable:$true] %s17_s13 }
   0x3   :  { %s341_s14 = scalar_lea.vmem %s18_s13, 1024  ;;  %p346_p1 = scmp.lt.s32.totalorder %s18_s13, %s18_s13 }
   0x4   :  { %p342_p0 = scmp.ne.s32.totalorder %s18_s13, %s341_s14  ;;  %p347_p2 = scmp.lt.s32.totalorder %s341_s14, %s341_s14 }
   0x6   :  { %p348_p3 = por %p347_p2, %p346_p1 }
   0x8   :  { %p349_p4 = pnand %p348_p3, %p342_p0 }
   0xa   :  { %352 = shalt.err (!%p349_p4)
}
   0xb   :  { %s378_s15 = smov 256   ;;  %s379_s16 = smov 16  }
   0xc   :  { %23 = dma.hbm_to_vmem [thread:$0]  %s431_s1, 1024, %s18_s13, [#allocation4], %s378_s15, %s378_s15, %s379_s16  }
   0xd   :  { %373 = dma.done.wait [#allocation4], 1024  }
   0xe   :  { %374 = vsyncadd [#allocation4], 4294966272  ;;  %v380_v0 = vmov 0.0   ;;  %v381_v1 = vmov 0   ;;  %v108_v2 = vld [vmem:[#allocation3 + $0x38] sm:$0xff]  ;;  %v107_v3 = vld [vmem:[#allocation3 + $0x30] sm:$0xff]  ;;  %v84_v44 = vlaneseq }
   0xf   :  { %180 = vmatprep.mubr.f32.mxu0 %v380_v0  ;;  %186 = vmatprep.mubr.f32.mxu1 %v380_v0  ;;  %v106_v4 = vld [vmem:[#allocation3 + $0x28] sm:$0xff]  ;;  %v105_v5 = vld [vmem:[#allocation3 + $0x20] sm:$0xff]  ;;  %v104_v6 = vld [vmem:[#allocation3 + $0x18] sm:$0xff]  ;;  %v54_v16 = vmul.f32 %v107_v3, %v107_v3  ;;  %v55_v17 = vmul.f32 %v108_v2, %v108_v2  ;;  %vm109_vm0 = vcmask 261120   ;;  %v382_v42 = vmov 1966171168  }
  0x10   :  { %328 = vset.pattern.permute.xlu0 %v381_v1  ;;  %140 = vmatprep.subr.mxu0 %v108_v2  ;;  %v103_v7 = vld [vmem:[#allocation3 + $0x10] sm:$0xff]  ;;  %v102_v8 = vld [vmem:[#allocation3 + $0x8] sm:$0xff]  ;;  %v101_v9 = vld [vmem:[#allocation3] sm:$0xff]  ;;  %v51_v11 = vmul.f32 %v104_v6, %v104_v6  ;;  %v53_v12 = vmul.f32 %v106_v4, %v106_v4  ;;  %v52_v15 = vmul.f32 %v105_v5, %v105_v5  ;;  %v82_v43 = vunpack.c.l.s4 %v382_v42 }
  0x11   :  { %313 = vmatprep.subr.mxu1 %v108_v2  ;;  %141 = vmatpush1.msra.mxu0 %v107_v3  ;;  %v50_v10 = vmul.f32 %v103_v7, %v103_v7  ;;  %v48_v13 = vmul.f32 %v101_v9, %v101_v9  ;;  %v49_v14 = vmul.f32 %v102_v8, %v102_v8  ;;  %v31_v20 = vld [vmem:[%s430_s0] sm:$0xff]  ;;  %v32_v21 = vld [vmem:[%s430_s0 + $0x8] sm:$0xff]  ;;  %v85_v46 = vshrl.u32 %v84_v44, 7  ;;  %s383_s0 = smov [#allocation6]  }
  0x12   :  { %317 = vmatpush1.msra.mxu1 %v107_v3  ;;  %142 = vmatprep.subr.mxu0 %v106_v4  ;;  %v34_v22 = vld [vmem:[%s432_s2] sm:$0xff]  ;;  %v35_v27 = vld [vmem:[%s432_s2 + $0x8] sm:$0xff]  ;;  %v83_v45 = vunpack.c.0.s8 %v82_v43  ;;  %vm98_vm1 = vcmp.lt.s32.totalorder %v84_v44, 256  ;;  %v218_v57 = vand.u32 127, %v84_v44  ;;  %s283_s2 = sshll.u32 %s383_s0, 4  ;;  %s284_s2 = int_to_ptr.vmem [resolvable:$true] %s283_s2 }
  0x13   :  { %314 = vmatprep.subr.mxu1 %v106_v4  ;;  %143 = vmatpush1.msra.mxu0 %v105_v5  ;;  %v56_v18 = vadd.f32 %v50_v10, %v48_v13  ;;  %v65_v19 = vadd.f32 %v51_v11, %v49_v14  ;;  %v197_v53 = vsub.s32 0, %v85_v46  ;;  %v201_v55 = vsub.s32 1, %v85_v46  ;;  %s353_s26 = scalar_lea.vmem %s284_s2, 512  ;;  %p358_p6 = scmp.lt.s32.totalorder %s284_s2, %s284_s2 }
  0x14   :  { %318 = vmatpush1.msra.mxu1 %v105_v5  ;;  %144 = vmatprep.subr.mxu0 %v104_v6  ;;  %v86_v48 = vsub.s32 %v83_v45, %v85_v46  ;;  %v219_v1 = vadd.s32 128, %v218_v57  ;;  %p354_p5 = scmp.ne.s32.totalorder %s284_s2, %s353_s26  ;;  %p359_p7 = scmp.lt.s32.totalorder %s353_s26, %s353_s26 }
  0x15   :  { %315 = vmatprep.subr.mxu1 %v104_v6  ;;  %145 = vmatpush1.msra.mxu0 %v103_v7  ;;  %v57_v23 = vadd.f32 %v56_v18, %v52_v15  ;;  %v66_v24 = vadd.f32 %v65_v19, %v53_v12 }
  0x16   :  { %319 = vmatpush1.msra.mxu1 %v103_v7  ;;  %146 = vmatprep.subr.mxu0 %v102_v8  ;;  %p360_p8 = por %p359_p7, %p358_p6 }
  0x17   :  { %316 = vmatprep.subr.mxu1 %v102_v8  ;;  %147 = vmatpush1.msra.mxu0 %v101_v9  ;;  %v58_v25 = vadd.f32 %v57_v23, %v54_v16  ;;  %v67_v26 = vadd.f32 %v66_v24, %v55_v17 }
  0x18   :  { %320 = vmatpush1.msra.mxu1 %v101_v9  ;;  %295 = vmatmul.mubr.msk.f32.vlgmr.msra.gmra.mxu0 %vm109_vm0, %v31_v20  ;;  %p361_p9 = pnand %p360_p8, %p354_p5 }
  0x19   :  { %296 = vmatmul.mubr.msk.f32.vlgmr.msra.gmra.mxu1 %vm109_vm0, %v32_v21  ;;  %225 = vperm.xlu0 %328, %v34_v22   ;;  %v59_v28 = vrot.slane %v58_v25, 4  ;;  %v68_v29 = vrot.slane %v67_v26, 4 }
  0x1b   :  { %v60_v30 = vadd.f32 %v59_v28, %v58_v25  ;;  %v69_v31 = vadd.f32 %v68_v29, %v67_v26 }
  0x1d   :  { %228 = vperm.xlu0 %328, %v35_v27   ;;  %v61_v32 = vrot.slane %v60_v30, 2  ;;  %v70_v33 = vrot.slane %v69_v31, 2 }
  0x1f   :  { %v62_v34 = vadd.f32 %v61_v32, %v60_v30  ;;  %v71_v35 = vadd.f32 %v70_v33, %v69_v31 }
  0x21   :  { %v63_v36 = vrot.slane %v62_v34, 1  ;;  %v72_v37 = vrot.slane %v71_v35, 1 }
  0x23   :  { %v64_v38 = vadd.f32 %v63_v36, %v62_v34  ;;  %v73_v39 = vadd.f32 %v72_v37, %v71_v35 }
  0x25   :  { %v74_v40 = vmax.f32 %v64_v38, 1e-24  ;;  %v75_v41 = vmax.f32 %v73_v39, 1e-24 }
  0x27   :  { %329 = vrsqrt.f32 %v74_v40 }
  0x28   :  { %331 = vrsqrt.f32 %v75_v41 }
  0x34   :  { %v330_v47 = vpop.eup %329 }
  0x35   :  { %v332_v49 = vpop.eup %331 }
  0x36   :  { %v80_v50 = vcombine.low %v330_v47, %v332_v49 }
  0x38   :  { %v87_v51 = vrot.slane %v80_v50, %v86_v48 }
  0x3a   :  { %v94_v52 = vrot.slane %v87_v51, %v86_v48 }
  0x3c   :  { %100 = vst.msk [vmem:[#allocation2] sm:$0x3] %vm98_vm1, %v94_v52 }
  0x43   :  { %v193_v54 = vld [vmem:[#allocation2] sm:$0x3] }
  0x44   :  { %v198_v56 = vrot.slane %v193_v54, %v197_v53  ;;  %v202_v58 = vrot.slane %v193_v54, %v201_v55 }
  0x94   :  { %v226_v6 = vpop.permute.xlu0 %225 }
  0x95   :  { %vm230_vm2 = vcmp.eq.s32.totalorder %v218_v57, %v226_v6  ;;  %vm231_vm3 = vcmp.eq.s32.totalorder %v219_v1, %v226_v6 }
  0x98   :  { %v229_v29 = vpop.permute.xlu0 %228 }
  0x99   :  { %vm232_vm4 = vcmp.eq.s32.totalorder %v218_v57, %v229_v29  ;;  %vm233_vm5 = vcmp.eq.s32.totalorder %v219_v1, %v229_v29 }
  0xd8   :  { %v182_v59 = vpop.f32.mrf.mxu0 }
  0xd9   :  { %v188_v60 = vpop.f32.mrf.mxu1  ;;  %v205_v61 = vmul.f32 %v198_v56, %v182_v59 }
  0xda   :  { %v207_v62 = vmul.f32 %v198_v56, %v188_v60  ;;  %v184_v63 = vpop.f32.mrf.mxu0 }
  0xdb   :  { %v190_v0 = vpop.f32.mrf.mxu1  ;;  %v297_v2 = vclamps-f32 %v205_v61, 1.0  ;;  %v206_v4 = vmul.f32 %v202_v58, %v184_v63 }
  0xdc   :  { %v299_v3 = vclamps-f32 %v207_v62, 1.0  ;;  %v208_v5 = vmul.f32 %v202_v58, %v190_v0 }
  0xdd   :  { %v234_v7 = vsub.f32 1.25, %v297_v2  ;;  %v301_v8 = vadd.f32 0.25, %v297_v2  ;;  %v305_v9 = vadd.f32 -0.75, %v297_v2  ;;  %v309_v10 = vadd.f32 -0.25, %v297_v2 }
  0xde   :  { %v236_v11 = vsub.f32 1.25, %v299_v3  ;;  %v303_v12 = vadd.f32 0.25, %v299_v3  ;;  %v298_v15 = vclamps-f32 %v206_v4, 1.0  ;;  %v300_v16 = vclamps-f32 %v208_v5, 1.0 }
  0xdf   :  { %v238_v13 = vmax.f32 %v234_v7, 0.0  ;;  %v246_v14 = vmax.f32 %v301_v8, 0.0  ;;  %v307_v17 = vadd.f32 -0.75, %v299_v3  ;;  %v311_v18 = vadd.f32 -0.25, %v299_v3 }
  0xe0   :  { %v240_v19 = vmax.f32 %v236_v11, 0.0  ;;  %v248_v20 = vmax.f32 %v303_v12, 0.0  ;;  %v235_v21 = vsub.f32 1.25, %v298_v15  ;;  %v302_v22 = vadd.f32 0.25, %v298_v15 }
  0xe1   :  { %v306_v23 = vadd.f32 -0.75, %v298_v15  ;;  %v310_v24 = vadd.f32 -0.25, %v298_v15  ;;  %v237_v25 = vsub.f32 1.25, %v300_v16  ;;  %v304_v26 = vadd.f32 0.25, %v300_v16 }
  0xe2   :  { %v308_v27 = vadd.f32 -0.75, %v300_v16  ;;  %v312_v28 = vadd.f32 -0.25, %v300_v16  ;;  %v239_v30 = vmax.f32 %v235_v21, 0.0  ;;  %v247_v31 = vmax.f32 %v302_v22, 0.0 }
  0xe3   :  { %v254_v32 = vmul.f32 %v305_v9, %v238_v13  ;;  %v262_v33 = vmul.f32 %v309_v10, %v246_v14  ;;  %v241_v34 = vmax.f32 %v237_v25, 0.0  ;;  %v249_v35 = vmax.f32 %v304_v26, 0.0 }
  0xe4   :  { %v256_v36 = vmul.f32 %v307_v17, %v240_v19  ;;  %v264_v37 = vmul.f32 %v311_v18, %v248_v20  ;;  %v255_v38 = vmul.f32 %v306_v23, %v239_v30  ;;  %v263_v39 = vmul.f32 %v310_v24, %v247_v31 }
  0xe5   :  { %v266_v40 = vsel %vm230_vm2, %v254_v32, %v262_v33  ;;  %v257_v42 = vmul.f32 %v308_v27, %v241_v34  ;;  %v265_v43 = vmul.f32 %v312_v28, %v249_v35 }
  0xe6   :  { %v270_v41 = vmul.f32 256.0, %v266_v40  ;;  %v268_v44 = vsel %vm232_vm4, %v256_v36, %v264_v37  ;;  %v267_v45 = vsel %vm231_vm3, %v255_v38, %v263_v39 }
  0xe7   :  { %v272_v46 = vmul.f32 256.0, %v268_v44  ;;  %v271_v47 = vmul.f32 256.0, %v267_v45  ;;  %v269_v48 = vsel %vm233_vm5, %v257_v42, %v265_v43 }
  0xe8   :  { %274 = vst [vmem:[#allocation6] sm:$0xff] %v270_v41  ;;  %v273_v49 = vmul.f32 256.0, %v269_v48 }
  0xe9   :  { %276 = vst [vmem:[#allocation6 + $0x10] sm:$0xff] %v272_v46  ;;  %275 = vst [vmem:[#allocation6 + $0x8] sm:$0xff] %v271_v47 }
  0xea   :  { %277 = vst [vmem:[#allocation6 + $0x18] sm:$0xff] %v273_v49 }
  0xeb   :  { %364 = shalt.err (!%p361_p9)
}
  0xec   :  { %289 = dma.vmem_to_hbm [thread:$0]  %s284_s2, 512, %s433_s3, [#allocation5], %s378_s15, %s378_s15, %s379_s16  }
  0xed   :  { %375 = dma.done.wait [#allocation5], 512  }
  0xee   :  { %376 = vsyncadd [#allocation5], 4294966784 }
  0xef   :  { %293 = vsyncpa [#allocation4], 1 }
  0xf0   :  { %294 = vsyncpa [#allocation5], 1 }

</bundles_post_ra>
